<compile_context>
chip_gen: v7x
topology: tpu7x:2x2x1
jax: 0.10.0
libtpu: 0.0.40
codegen_flags: <defaults>
</compile_context>

<pallas_src>
import functools
import random

import numpy as np
import jax
import jax.numpy as jnp
from jax.experimental import pallas as pl
from jax.experimental.pallas import tpu as pltpu


# ----------------------------- configuration ---------------------------------
class Config:
    enc_in = 4          # channels
    batch_size = 2
    seq_len = 64
    pred_len = 8
    kernel_size = 3
    dropout = 0.1       # eval mode -> identity
    num_levels = 2
    layer_nodes = 2
    gpu = 0


CFG = Config()
BN_EPS = 1e-5
CONV_STRIDE = 2
CONV_DILATION = 3
POOL_K = CFG.kernel_size
POOL_STRIDE = 2
POOL_PAD = 1
LANE = 128                      # lane padding: pool-tap chunks / conv outputs aligned to vreg width

_dpad_rng = random.Random(0)


def _round_up(v, m):
    return ((v + m - 1) // m) * m


# --------------------- static layout planning (host / numpy) -----------------
@functools.lru_cache(maxsize=None)
def dpad_plan(a_len, num_padding):
    """Reference dpadding as a static plan: source pool column for each output column."""
    if num_padding <= 0:
        return tuple(range(a_len))
    target_len = a_len + num_padding
    skip_cnt = a_len // num_padding
    mult = None
    if skip_cnt == 0:
        mult = num_padding // a_len
        skip_cnt = 1
    plan, left = [], num_padding
    for i in range(a_len):
        if left == 0:
            plan += list(range(i, a_len))
            break
        if i % skip_cnt == 0:
            plan.append(i)
            left -= 1
        if mult is not None:
            plan += [i] * mult
        plan.append(i)
    while len(plan) > target_len:
        # TODO(synk): reference pops with an unseeded randrange (and may pop a whole tail slice);
        # seeded single-column pop here -- this branch never triggers at these shapes.
        plan.pop(_dpad_rng.randrange(len(plan)))
    return tuple(plan)


def joint_plan(a_len, b_len, node_idx):
    """Block.joint as a static plan: 0 -> out_cur (a), 1 -> out_prev (b)."""
    skip = 2 ** (node_idx - 1)
    plan, cnt = [], 0
    for i in range(a_len):
        for _ in range(skip):
            if cnt >= b_len:
                break
            plan.append((1, cnt))
            cnt += 1
        plan.append((0, i))
    return plan


def joint_explict_plan(la, lb, lc):
    """Block.joint_explict as a static plan: 0 -> out_mean, 1 -> prev, 2 -> out_std."""
    plan, cnt = [], 0
    m = min(la, lb, lc)
    while cnt < m:
        plan += [(0, cnt), (1, cnt), (2, cnt)]
        cnt += 1
    for s, l in enumerate((la, lb, lc)):
        plan += [(s, t) for t in range(cnt, l)]
    return plan


class SkipState:
    def __init__(self):
        self.p, self.s, self.d, self.n, self.t = 1, 1, 2, 3, False


def sew_up_plan(a_len, b_len, cur_layer, sp, st):
    """Block.sew_up as a static plan: 0 -> cur_layer_out (a), 1 -> prev_layer_out (b)."""
    if cur_layer == 0:
        return [(0, t) for t in range(a_len)]
    plan = []
    cnt_a = cnt_b = 0
    while cnt_a < a_len:
        top_a, top_b = cnt_a, cnt_b          # reference snapshots a[cnt_a] / b[cnt_b] here
        if sp:
            break
        if cnt_a == 0:
            for _ in range(st.p):
                plan.append((1, top_b))
                cnt_b += 1
            if cur_layer % 2 != 0:
                plan.append((0, top_a))
                cnt_a += 1
            if cnt_a == 0:
                cnt_a = 1
            continue
        for _ in range(st.n):
            if cnt_b >= b_len:
                break
            plan.append((1, cnt_b))
            cnt_b += 1
        if not st.t:
            for _ in range(st.s):
                if cnt_b >= b_len:
                    break
                plan.append((1, cnt_b))
                cnt_b += 1
                st.t = True
        else:
            for _ in range(st.d):
                for _i in range(st.s):
                    if cnt_b >= b_len:
                        break
                    plan.append((1, cnt_b))
                    cnt_b += 1
                if cnt_a >= a_len:
                    break
                plan.append((0, cnt_a))
                cnt_a += 1
                st.t = False
            continue
        plan.append((0, cnt_a))
        cnt_a += 1
    plan += [(1, t) for t in range(cnt_b, b_len)]
    if sp:
        plan += [(0, t) for t in range(cnt_a, a_len)]
    st.s += 1
    st.n = 3 * st.n + st.s + st.d * st.s
    if cur_layer % 2 != 0:
        st.p += 1
    return plan


def build_block_plan(cfg):
    """Simulate Block.forward symbolically on column descriptors.

    Descriptors: ("xc", t)      -> column t of the (B, C, seq_len) input,
                 ("conv", k, l) -> column l of the k-th fused conv branch output (no residual).
    Returns the conv source specs and the final column layout feeding nn.Linear.
    """
    N = cfg.layer_nodes
    nodes = {}

    def build_graph(desc, cur_num, cur_level, index):
        d = list(desc[index::N])
        if len(d) < 10:
            # TODO(synk): mean/std/median stat-padding branch (node shorter than 10) not composed.
            raise NotImplementedError("stat-padding branch not supported at these shapes")
        nodes[cur_num] = (d, False)
        if cur_level < cfg.num_levels - 1:
            build_graph(d, cur_num + N, cur_level + 1, index)

    base = [("xc", t) for t in range(cfg.seq_len)]
    for i in range(N):
        build_graph(base, i, 0, i)

    st = SkipState()
    convs = []
    prev_layer = None
    for lvl in range(cfg.num_levels):
        cur_layer = None
        prev = None
        for j in range(N + 1):
            num = lvl * N + (0 if j == N else j)
            idx = j % N
            d, sp = nodes[num]
            if idx != 0:
                x_desc, p_desc = d, prev
                # TODO(synk): torch.diff length-matching path is not composed (never hit here).
                assert len(p_desc) == len(x_desc)
                assert all(s[0] == "xc" for s in x_desc) and all(s[0] == "xc" for s in p_desc)
                cid = len(convs)
                convs.append({"x": x_desc, "prev": p_desc})
                out = [("conv", cid, l) for l in range(len(x_desc))]
            else:
                out = d
            prev = out
            if cur_layer is None:
                cur_layer = out
            if idx != 0:
                jp = joint_plan(len(prev), len(cur_layer), idx)
                srcs = (prev, cur_layer)
                cur_layer = [srcs[s][t] for (s, t) in jp]
            if j == N:
                sp_plan = sew_up_plan(len(cur_layer),
                                      0 if prev_layer is None else len(prev_layer),
                                      lvl, sp, st)
                srcs = (cur_layer, prev_layer)
                prev_layer = [srcs[s][t] for (s, t) in sp_plan]
    return convs, prev_layer


def build_conv_gather(convs, cfg):
    """Compose joint_explict + Conv1d im2col + MaxPool windows + dpadding into one flat
    gather index into the (B*C, seq_len) input, plus static 0.8/0.2/1.0 mixing planes."""
    B, C, K = cfg.batch_size, cfg.enc_in, cfg.kernel_size
    Ltot = cfg.seq_len
    n_conv = len(convs)
    rows = B * K * C
    rows_p = _round_up(rows, 8)
    lane = _round_up(max(len(cv["x"]) for cv in convs), LANE)
    lanes = POOL_K * lane
    gidx = np.zeros((n_conv, 2 * rows_p, lanes), np.int32)    # [x-gather rows ; prev-gather rows]
    coef = np.zeros((n_conv, 3 * rows_p, lanes), np.float32)  # [mean-sel ; std-sel ; prev-coef]
    for cid, cv in enumerate(convs):
        x_t = [d[1] for d in cv["x"]]
        p_t = [d[1] for d in cv["prev"]]
        L = len(x_t)
        jplan = joint_explict_plan(L, len(p_t), L)
        Lj = len(jplan)
        Lconv = (Lj - CONV_DILATION * (K - 1) - 1) // CONV_STRIDE + 1
        Lpool = (Lconv + 2 * POOL_PAD - POOL_K) // POOL_STRIDE + 1
        dplan = dpad_plan(Lpool, L - Lpool)
        assert len(dplan) == L
        for l in range(L):
            q = dplan[l]
            for wdx in range(POOL_K):
                # clamped edge tap stays inside the window -> identical to -inf padded MaxPool
                p = min(max(POOL_STRIDE * q - POOL_PAD + wdx, 0), Lconv - 1)
                ln = wdx * lane + l
                for kk in range(K):
                    src, t = jplan[CONV_STRIDE * p + CONV_DILATION * kk]
                    if src == 0:      # 0.8 * x / mean + 0.2 * prev
                        xi, pi, cm, cs, cp = x_t[t], p_t[t], 0.8, 0.0, 0.2
                    elif src == 2:    # 0.8 * x / std  + 0.2 * prev
                        xi, pi, cm, cs, cp = x_t[t], p_t[t], 0.0, 0.8, 0.2
                    else:             # prev column
                        xi, pi, cm, cs, cp = x_t[min(t, L - 1)], p_t[t], 0.0, 0.0, 1.0
                    for b in range(B):
                        for c in range(C):
                            r = b * K * C + kk * C + c
                            flat = (b * C + c) * Ltot
                            gidx[cid, r, ln] = flat + xi
                            gidx[cid, rows_p + r, ln] = flat + pi
                            coef[cid, r, ln] = cm
                            coef[cid, rows_p + r, ln] = cs
                            coef[cid, 2 * rows_p + r, ln] = cp
    return gidx, coef, rows_p, lane


def build_weights(conv_w, conv_b, bn_scale, bn_shift, lin_w, convs, final_desc, cfg, lane, rows_p):
    """Fold batch into sublanes (block-diag conv weight), pre-broadcast bias/BN rows, and fold
    joint/sew_up layout + conv residual + the final nn.Linear into per-source weights."""
    B, C, K, P = cfg.batch_size, cfg.enc_in, cfg.kernel_size, cfg.pred_len
    bc = B * C
    w_bd = np.zeros((bc, rows_p), np.float32)
    for b in range(B):
        for o in range(C):
            for c in range(C):
                for kk in range(K):
                    w_bd[b * C + o, b * K * C + kk * C + c] = conv_w[o, c, kk]
    bias_r = np.tile(conv_b, B)
    scale_r = np.tile(bn_scale, B)
    shift_r = np.tile(bn_shift, B)
    chan = np.concatenate(
        [np.broadcast_to(v[:, None], (bc, lane)) for v in (bias_r, scale_r, shift_r)],
        axis=0).astype(np.float32)
    wx = np.zeros((cfg.seq_len, P), np.float32)
    wc = np.zeros((len(convs), lane, P), np.float32)
    for f, d in enumerate(final_desc):
        if d[0] == "xc":
            wx[d[1], :] += lin_w[:, f]
        else:                                   # ("conv", cid, l) = residual x + epilogue
            cid, l = d[1], d[2]
            wc[cid, l, :] += lin_w[:, f]
            wx[convs[cid]["x"][l][1], :] += lin_w[:, f]
    return w_bd, chan, wx, wc


# ------------------------------ pallas kernels --------------------------------
def _fused_conv_kernel(scal_ref, gxp_ref, coef_ref, chan_ref, w_ref, o_ref, *,
                       rows_p, pool_k, lane, bc):
    inv_m = scal_ref[0]
    inv_s = scal_ref[1]
    xg = gxp_ref[0:rows_p, :]
    pg = gxp_ref[rows_p:2 * rows_p, :]
    coefx = coef_ref[0:rows_p, :] * inv_m + coef_ref[rows_p:2 * rows_p, :] * inv_s
    yg = xg * coefx + pg * coef_ref[2 * rows_p:3 * rows_p, :]      # joint_explict(out_mean, prev, out_std)
    z = jnp.dot(w_ref[...], yg, preferred_element_type=jnp.float32)          # (bc, pool_k*lane)
    acc = z[:, 0:lane]
    for wdx in range(1, pool_k):                                             # MaxPool over lane-aligned taps
        acc = jnp.maximum(acc, z[:, wdx * lane:(wdx + 1) * lane])
    acc = acc + chan_ref[0:bc, :]                                            # conv bias (const over window)
    e = jnp.where(acc > 0, acc, jnp.exp(jnp.minimum(acc, 0.0)) - 1.0)        # ELU; Dropout = identity
    g = jnp.exp(e * e * (-0.5))                                              # exp(conv(.)**2 / -2)
    zn = g * chan_ref[bc:2 * bc, :] + chan_ref[2 * bc:3 * bc, :]             # BatchNorm1d (eval, folded affine)
    o_ref[...] = jnp.where(zn > 0, zn, jnp.exp(jnp.minimum(zn, 0.0)) - 1.0)  # ELU; residual folded into Wx


def _linear_kernel(x_ref, wx_ref, co_ref, wc_ref, b_ref, s_ref, o_ref, *, n_conv):
    acc = jnp.dot(x_ref[...], wx_ref[...], preferred_element_type=jnp.float32)
    for g in range(n_conv):
        acc = acc + jnp.dot(co_ref[g], wc_ref[g], preferred_element_type=jnp.float32)
    o_ref[...] = acc + b_ref[...] + s_ref[...]


# ------------------------------ kernel wrappers -------------------------------
def fused_conv_bn(scal, xpg, params):
    n_conv = xpg.shape[0]
    rows_p = xpg.shape[1] // 2
    lanes = xpg.shape[2]
    bc = params["chan"].shape[0] // 3
    lane = params["chan"].shape[1]
    kernel = functools.partial(_fused_conv_kernel, rows_p=rows_p, pool_k=POOL_K, lane=lane, bc=bc)
    return pl.pallas_call(
        kernel,
        out_shape=jax.ShapeDtypeStruct((n_conv, bc, lane), jnp.float32),
        grid=(n_conv,),
        in_specs=[
            pl.BlockSpec(memory_space=pltpu.MemorySpace.SMEM),                # [1/mean, 1/std]
            pl.BlockSpec((None, 2 * rows_p, lanes), lambda g: (g, 0, 0)),     # gathered x / prev (im2col)
            pl.BlockSpec((None, 3 * rows_p, lanes), lambda g: (g, 0, 0)),     # static mix coefficients
            pl.BlockSpec((3 * bc, lane), lambda g: (0, 0)),                   # bias / BN scale / BN shift rows
            pl.BlockSpec((bc, rows_p), lambda g: (0, 0)),                     # block-diag weight-norm conv weight
        ],
        out_specs=pl.BlockSpec((None, bc, lane), lambda g: (g, 0, 0)),
        compiler_params=pltpu.CompilerParams(dimension_semantics=("parallel",)),
    )(scal, xpg, params["coef"], params["chan"], params["w_bd"])


def final_linear(xc_flat, co, seq_col, params):
    bc = xc_flat.shape[0]
    P = params["lin_b_row"].shape[1]
    kernel = functools.partial(_linear_kernel, n_conv=co.shape[0])
    vmem = pl.BlockSpec(memory_space=pltpu.MemorySpace.VMEM)
    return pl.pallas_call(
        kernel,
        out_shape=jax.ShapeDtypeStruct((bc, P), jnp.float32),
        in_specs=[vmem] * 6,
        out_specs=vmem,
    )(xc_flat, params["wx"], co, params["wc"], params["lin_b_row"], seq_col)


# ------------------------------- model forward --------------------------------
def model_forward(x, params):
    B, L, C = x.shape
    seq_last = x[:, -1:, :]
    xc = jnp.transpose(x - seq_last, (0, 2, 1)).astype(jnp.float32)          # (B, C, L)
    n = xc.size
    mean = jnp.mean(xc)
    std = jnp.sqrt(jnp.sum((xc - mean) ** 2) / (n - 1))                      # torch unbiased std
    # TODO(synk): torch.median is computed by the reference but only consumed when a node's time
    # length drops below 10, which never happens at these shapes, so it is skipped.
    xc_flat = xc.reshape(B * C, L)
    xpg = jnp.take(xc_flat.reshape(-1), params["gidx"])                      # one composed gather
    scal = jnp.stack([1.0 / mean, 1.0 / std]).astype(jnp.float32)            # SMEM scalars
    co = fused_conv_bn(scal, xpg, params)                                    # (n_conv, B*C, lane)
    seq_col = seq_last[:, 0, :].reshape(B * C, 1)
    out_flat = final_linear(xc_flat, co, seq_col, params)                    # (B*C, pred_len)
    return jnp.transpose(out_flat.reshape(B, C, -1), (0, 2, 1))              # (B, pred_len, C)


# ------------------- pure-JAX reference (eval mode, for checking) -------------
def _elu(v):
    return jnp.where(v > 0, v, jnp.exp(jnp.minimum(v, 0.0)) - 1.0)


def ref_forward(x, conv_w, conv_b, bn_scale, bn_shift, lin_w, lin_b):
    cfg = CFG
    N = cfg.layer_nodes
    hi = jax.lax.Precision.HIGHEST
    seq_last = x[:, -1:, :]
    xc = jnp.transpose(x - seq_last, (0, 2, 1)).astype(jnp.float32)
    n = xc.size
    mean = jnp.mean(xc)
    std = jnp.sqrt(jnp.sum((xc - mean) ** 2) / (n - 1))

    nodes = {}

    def build_graph(xn, cur_num, cur_level, index):
        xn = xn[:, :, index::N]
        assert xn.shape[2] >= 10
        nodes[cur_num] = xn
        if cur_level < cfg.num_levels - 1:
            build_graph(xn, cur_num + N, cur_level + 1, index)

    for i in range(N):
        build_graph(xc, i, 0, i)

    def conv_pool_elu(y):
        K = cfg.kernel_size
        Lconv = (y.shape[2] - CONV_DILATION * (K - 1) - 1) // CONV_STRIDE + 1
        ci = np.arange(Lconv)[:, None] * CONV_STRIDE + np.arange(K)[None, :] * CONV_DILATION
        conv = jnp.einsum("bclk,ock->bol", y[:, :, ci], conv_w, precision=hi) + conv_b[None, :, None]
        Lpool = (Lconv + 2 * POOL_PAD - POOL_K) // POOL_STRIDE + 1
        padded = jnp.pad(conv, ((0, 0), (0, 0), (POOL_PAD, POOL_PAD)), constant_values=-jnp.inf)
        pi = np.arange(Lpool)[:, None] * POOL_STRIDE + np.arange(POOL_K)[None, :]
        return _elu(jnp.max(padded[:, :, pi], axis=-1))

    def communicate(xn, prev, node_idx):
        if node_idx == 0:
            return xn
        while prev.shape[2] - xn.shape[2]:
            prev = prev[:, :, 1:] - prev[:, :, :-1]
        out_mean = 0.8 * xn / mean + 0.2 * prev
        out_std = 0.8 * xn / std + 0.2 * prev
        y = jnp.stack([out_mean, prev, out_std], axis=-1).reshape(xn.shape[0], xn.shape[1], -1)
        g = jnp.exp(conv_pool_elu(y) ** 2 / -2)
        g = g[:, :, np.array(dpad_plan(g.shape[2], xn.shape[2] - g.shape[2]), np.int32)]
        return xn + _elu(g * bn_scale[None, :, None] + bn_shift[None, :, None])

    def gather_cols(srcs, plan):
        offs = np.cumsum([0] + [int(s.shape[2]) for s in srcs[:-1]])
        idx = np.array([offs[s] + t for (s, t) in plan], np.int32)
        return jnp.take(jnp.concatenate(srcs, axis=2), idx, axis=2)

    st = SkipState()
    prev_layer = None
    for lvl in range(cfg.num_levels):
        cur_layer = None
        prev = None
        for j in range(N + 1):
            num = lvl * N + (0 if j == N else j)
            idx = j % N
            out = communicate(nodes[num], prev, idx)
            prev = out
            if cur_layer is None:
                cur_layer = out
            if idx != 0:
                cur_layer = gather_cols([prev, cur_layer],
                                        joint_plan(prev.shape[2], cur_layer.shape[2], idx))
            if j == N:
                plan = sew_up_plan(cur_layer.shape[2],
                                   0 if prev_layer is None else prev_layer.shape[2],
                                   lvl, False, st)
                prev_layer = cur_layer if lvl == 0 else gather_cols([cur_layer, prev_layer], plan)
    out = jnp.einsum("bcl,pl->bcp", prev_layer, lin_w, precision=hi) + lin_b[None, None, :]
    return jnp.transpose(out, (0, 2, 1)) + seq_last


# ------------------------------------ main ------------------------------------
if __name__ == "__main__":
    B, C, K, P = CFG.batch_size, CFG.enc_in, CFG.kernel_size, CFG.pred_len
    key = jax.random.PRNGKey(0)
    x = jax.random.normal(key, (B, CFG.seq_len, C), dtype=jnp.float32)

    k1, k2, k3, k4 = jax.random.split(jax.random.PRNGKey(42), 4)
    # TODO(synk): conv_w is used as the weight-norm *effective* weight (g*v/||v|| == v at init);
    # loading real checkpoints would require applying the reparameterisation first.
    conv_w = np.asarray(jax.random.normal(k1, (C, C, K), jnp.float32)) * 0.3
    conv_b = np.asarray(jax.random.normal(k2, (C,), jnp.float32)) * 0.1
    bn_scale = (np.ones((C,), np.float32) / np.sqrt(1.0 + BN_EPS)).astype(np.float32)
    bn_shift = np.zeros((C,), np.float32)

    convs, final_desc = build_block_plan(CFG)
    l_feat = len(final_desc)
    # TODO(synk): reference hard-codes nn.Linear(in_features=303) for its full-size config;
    # in_features is derived from the Block output here (96 for this config).
    lin_w = np.asarray(jax.random.normal(k3, (P, l_feat), jnp.float32)) * 0.05
    lin_b = np.asarray(jax.random.normal(k4, (P,), jnp.float32)) * 0.05

    gidx, coef, rows_p, lane = build_conv_gather(convs, CFG)
    w_bd, chan, wx, wc = build_weights(conv_w, conv_b, bn_scale, bn_shift, lin_w,
                                       convs, final_desc, CFG, lane, rows_p)
    params = {
        "gidx": jnp.asarray(gidx),
        "coef": jnp.asarray(coef),
        "chan": jnp.asarray(chan),
        "w_bd": jnp.asarray(w_bd),
        "wx": jnp.asarray(wx),
        "wc": jnp.asarray(wc),
        "lin_b_row": jnp.asarray(lin_b.reshape(1, P)),
    }

    fwd = jax.jit(model_forward)
    out = jax.block_until_ready(fwd(x, params))
    assert out.shape == (B, P, C), out.shape
    assert bool(jnp.all(jnp.isfinite(out))), "non-finite output"

    # Cross-check the fused Pallas path against a pure-JAX implementation of the module.
    ref = ref_forward(x, jnp.asarray(conv_w), jnp.asarray(conv_b),
                      jnp.asarray(bn_scale), jnp.asarray(bn_shift),
                      jnp.asarray(lin_w), jnp.asarray(lin_b))
    np.testing.assert_allclose(np.asarray(out), np.asarray(ref), rtol=1e-3, atol=1e-3)

    print("KERNEL_OK")
</pallas_src>

<mosaic_0001>
module attributes {stable_mosaic.version = 11 : i64} {
  func.func @_fused_conv_kernel(%arg0: i32, %arg1: memref<2xf32, #tpu.memory_space<smem>>, %arg2: memref<1x48x384xf32, #tpu.memory_space<vmem>>, %arg3: memref<1x72x384xf32, #tpu.memory_space<vmem>>, %arg4: memref<24x128xf32, #tpu.memory_space<vmem>>, %arg5: memref<8x24xf32, #tpu.memory_space<vmem>>, %arg6: memref<1x8x128xf32, #tpu.memory_space<vmem>>) attributes {dimension_semantics = [#tpu.dimension_semantics<parallel>], iteration_bounds = array<i64: 2>, scalar_prefetch = 0 : i64, scratch_operands = 0 : i64, tpu.core_type = #tpu.core_type<tc>, window_params = [{transform_indices = @transform_0, window_bounds = array<i64: 2>}, {transform_indices = @transform_1, window_bounds = array<i64: 1, 48, 384>}, {transform_indices = @transform_2, window_bounds = array<i64: 1, 72, 384>}, {pipeline_mode = #tpu.pipeline_mode<synchronous>, transform_indices = @transform_3, window_bounds = array<i64: 24, 128>}, {pipeline_mode = #tpu.pipeline_mode<synchronous>, transform_indices = @transform_4, window_bounds = array<i64: 8, 24>}, {transform_indices = @transform_5, window_bounds = array<i64: 1, 8, 128>}]} {
    %c0 = arith.constant 0 : index
    %0 = memref.load %arg1[%c0] : memref<2xf32, #tpu.memory_space<smem>>
    %c1 = arith.constant 1 : index
    %1 = memref.load %arg1[%c1] : memref<2xf32, #tpu.memory_space<smem>>
    %c0_0 = arith.constant 0 : index
    %c0_1 = arith.constant 0 : index
    %c0_2 = arith.constant 0 : index
    %2 = vector.load %arg2[%c0_0, %c0_1, %c0_2] : memref<1x48x384xf32, #tpu.memory_space<vmem>>, vector<1x24x384xf32>
    %3 = vector.shape_cast %2 : vector<1x24x384xf32> to vector<24x384xf32>
    %c0_3 = arith.constant 0 : index
    %c24 = arith.constant 24 : index
    %c0_4 = arith.constant 0 : index
    %4 = vector.load %arg2[%c0_3, %c24, %c0_4] : memref<1x48x384xf32, #tpu.memory_space<vmem>>, vector<1x24x384xf32>
    %5 = vector.shape_cast %4 : vector<1x24x384xf32> to vector<24x384xf32>
    %c0_5 = arith.constant 0 : index
    %c0_6 = arith.constant 0 : index
    %c0_7 = arith.constant 0 : index
    %6 = vector.load %arg3[%c0_5, %c0_6, %c0_7] : memref<1x72x384xf32, #tpu.memory_space<vmem>>, vector<1x24x384xf32>
    %7 = vector.shape_cast %6 : vector<1x24x384xf32> to vector<24x384xf32>
    %8 = vector.broadcast %0 : f32 to vector<24x384xf32>
    %9 = arith.mulf %7, %8 : vector<24x384xf32>
    %c0_8 = arith.constant 0 : index
    %c24_9 = arith.constant 24 : index
    %c0_10 = arith.constant 0 : index
    %10 = vector.load %arg3[%c0_8, %c24_9, %c0_10] : memref<1x72x384xf32, #tpu.memory_space<vmem>>, vector<1x24x384xf32>
    %11 = vector.shape_cast %10 : vector<1x24x384xf32> to vector<24x384xf32>
    %12 = vector.broadcast %1 : f32 to vector<24x384xf32>
    %13 = arith.mulf %11, %12 : vector<24x384xf32>
    %14 = arith.addf %9, %13 : vector<24x384xf32>
    %15 = arith.mulf %3, %14 : vector<24x384xf32>
    %c0_11 = arith.constant 0 : index
    %c48 = arith.constant 48 : index
    %c0_12 = arith.constant 0 : index
    %16 = vector.load %arg3[%c0_11, %c48, %c0_12] : memref<1x72x384xf32, #tpu.memory_space<vmem>>, vector<1x24x384xf32>
    %17 = vector.shape_cast %16 : vector<1x24x384xf32> to vector<24x384xf32>
    %18 = arith.mulf %5, %17 : vector<24x384xf32>
    %19 = arith.addf %15, %18 : vector<24x384xf32>
    %c0_13 = arith.constant 0 : index
    %c0_14 = arith.constant 0 : index
    %20 = vector.load %arg5[%c0_13, %c0_14] : memref<8x24xf32, #tpu.memory_space<vmem>>, vector<8x24xf32>
    %cst = arith.constant dense<0.000000e+00> : vector<8x384xf32>
    %21 = tpu.matmul %20, %19, %cst {dimension_numbers = #tpu.dot_dimension_numbers<[1], [0], [0], [1], [0, 0, 1, 1], [], []>} : vector<8x24xf32>, vector<24x384xf32>, vector<8x384xf32> -> vector<8x384xf32>
    %22 = vector.extract_strided_slice %21 {offsets = [0, 0], sizes = [8, 128], strides = [1, 1]} : vector<8x384xf32> to vector<8x128xf32>
    %23 = vector.extract_strided_slice %21 {offsets = [0, 128], sizes = [8, 128], strides = [1, 1]} : vector<8x384xf32> to vector<8x128xf32>
    %24 = arith.maximumf %22, %23 : vector<8x128xf32>
    %25 = vector.extract_strided_slice %21 {offsets = [0, 256], sizes = [8, 128], strides = [1, 1]} : vector<8x384xf32> to vector<8x128xf32>
    %26 = arith.maximumf %24, %25 : vector<8x128xf32>
    %c0_15 = arith.constant 0 : index
    %c0_16 = arith.constant 0 : index
    %27 = vector.load %arg4[%c0_15, %c0_16] : memref<24x128xf32, #tpu.memory_space<vmem>>, vector<8x128xf32>
    %28 = arith.addf %26, %27 : vector<8x128xf32>
    %cst_17 = arith.constant 0.000000e+00 : f32
    %29 = vector.broadcast %cst_17 : f32 to vector<8x128xf32>
    %30 = arith.cmpf ogt, %28, %29 : vector<8x128xf32>
    %cst_18 = arith.constant 0.000000e+00 : f32
    %31 = vector.broadcast %cst_18 : f32 to vector<8x128xf32>
    %32 = arith.minimumf %28, %31 : vector<8x128xf32>
    %33 = math.exp %32 : vector<8x128xf32>
    %cst_19 = arith.constant 1.000000e+00 : f32
    %34 = vector.broadcast %cst_19 : f32 to vector<8x128xf32>
    %35 = arith.subf %33, %34 : vector<8x128xf32>
    %36 = arith.select %30, %28, %35 : vector<8x128xi1>, vector<8x128xf32>
    %37 = arith.mulf %36, %36 : vector<8x128xf32>
    %cst_20 = arith.constant -5.000000e-01 : f32
    %38 = vector.broadcast %cst_20 : f32 to vector<8x128xf32>
    %39 = arith.mulf %37, %38 : vector<8x128xf32>
    %40 = math.exp %39 : vector<8x128xf32>
    %c8 = arith.constant 8 : index
    %c0_21 = arith.constant 0 : index
    %41 = vector.load %arg4[%c8, %c0_21] : memref<24x128xf32, #tpu.memory_space<vmem>>, vector<8x128xf32>
    %42 = arith.mulf %40, %41 : vector<8x128xf32>
    %c16 = arith.constant 16 : index
    %c0_22 = arith.constant 0 : index
    %43 = vector.load %arg4[%c16, %c0_22] : memref<24x128xf32, #tpu.memory_space<vmem>>, vector<8x128xf32>
    %44 = arith.addf %42, %43 : vector<8x128xf32>
    %cst_23 = arith.constant 0.000000e+00 : f32
    %45 = vector.broadcast %cst_23 : f32 to vector<8x128xf32>
    %46 = arith.cmpf ogt, %44, %45 : vector<8x128xf32>
    %cst_24 = arith.constant 0.000000e+00 : f32
    %47 = vector.broadcast %cst_24 : f32 to vector<8x128xf32>
    %48 = arith.minimumf %44, %47 : vector<8x128xf32>
    %49 = math.exp %48 : vector<8x128xf32>
    %cst_25 = arith.constant 1.000000e+00 : f32
    %50 = vector.broadcast %cst_25 : f32 to vector<8x128xf32>
    %51 = arith.subf %49, %50 : vector<8x128xf32>
    %52 = arith.select %46, %44, %51 : vector<8x128xi1>, vector<8x128xf32>
    %c0_26 = arith.constant 0 : index
    %c0_27 = arith.constant 0 : index
    %c0_28 = arith.constant 0 : index
    %53 = vector.load %arg6[%c0_26, %c0_27, %c0_28] : memref<1x8x128xf32, #tpu.memory_space<vmem>>, vector<1x8x128xf32>
    %54 = vector.shape_cast %53 : vector<1x8x128xf32> to vector<8x128xf32>
    %55 = vector.shape_cast %52 : vector<8x128xf32> to vector<1x8x128xf32>
    tpu.vector_store %arg6[%c0_26, %c0_27, %c0_28], %55 {strides = array<i32>} : memref<1x8x128xf32, #tpu.memory_space<vmem>>, vector<1x8x128xf32>,
    return
  }
  func.func @transform_0(%arg0: i32) -> i32 {
    %c0_i32 = arith.constant 0 : i32
    %c0_i32_0 = arith.constant 0 : i32
    return %c0_i32 : i32
  }
  func.func @transform_1(%arg0: i32) -> (i32, i32, i32) {
    %c0_i32 = arith.constant 0 : i32
    %c0_i32_0 = arith.constant 0 : i32
    %c0_i32_1 = arith.constant 0 : i32
    return %arg0, %c0_i32, %c0_i32_0 : i32, i32, i32
  }
  func.func @transform_2(%arg0: i32) -> (i32, i32, i32) {
    %c0_i32 = arith.constant 0 : i32
    %c0_i32_0 = arith.constant 0 : i32
    %c0_i32_1 = arith.constant 0 : i32
    return %arg0, %c0_i32, %c0_i32_0 : i32, i32, i32
  }
  func.func @transform_3(%arg0: i32) -> (i32, i32) {
    %c0_i32 = arith.constant 0 : i32
    %c0_i32_0 = arith.constant 0 : i32
    %c0_i32_1 = arith.constant 0 : i32
    return %c0_i32, %c0_i32_0 : i32, i32
  }
  func.func @transform_4(%arg0: i32) -> (i32, i32) {
    %c0_i32 = arith.constant 0 : i32
    %c0_i32_0 = arith.constant 0 : i32
    %c0_i32_1 = arith.constant 0 : i32
    return %c0_i32, %c0_i32_0 : i32, i32
  }
  func.func @transform_5(%arg0: i32) -> (i32, i32, i32) {
    %c0_i32 = arith.constant 0 : i32
    %c0_i32_0 = arith.constant 0 : i32
    %c0_i32_1 = arith.constant 0 : i32
    return %arg0, %c0_i32, %c0_i32_0 : i32, i32, i32
  }
}

module attributes {stable_mosaic.version = 11 : i64} {
  func.func @_linear_kernel(%arg0: memref<8x64xf32, #tpu.memory_space<vmem>>, %arg1: memref<64x8xf32, #tpu.memory_space<vmem>>, %arg2: memref<2x8x128xf32, #tpu.memory_space<vmem>>, %arg3: memref<2x128x8xf32, #tpu.memory_space<vmem>>, %arg4: memref<1x8xf32, #tpu.memory_space<vmem>>, %arg5: memref<8x1xf32, #tpu.memory_space<vmem>>, %arg6: memref<8x8xf32, #tpu.memory_space<vmem>>) attributes {dimension_semantics = [], scalar_prefetch = 0 : i64, scratch_operands = 0 : i64, tpu.core_type = #tpu.core_type<tc>} {
    %c0 = arith.constant 0 : index
    %c0_0 = arith.constant 0 : index
    %0 = vector.load %arg0[%c0, %c0_0] : memref<8x64xf32, #tpu.memory_space<vmem>>, vector<8x64xf32>
    %c0_1 = arith.constant 0 : index
    %c0_2 = arith.constant 0 : index
    %1 = vector.load %arg1[%c0_1, %c0_2] : memref<64x8xf32, #tpu.memory_space<vmem>>, vector<64x8xf32>
    %cst = arith.constant dense<0.000000e+00> : vector<8x8xf32>
    %2 = tpu.matmul %0, %1, %cst {dimension_numbers = #tpu.dot_dimension_numbers<[1], [0], [0], [1], [0, 0, 1, 1], [], []>} : vector<8x64xf32>, vector<64x8xf32>, vector<8x8xf32> -> vector<8x8xf32>
    %c0_3 = arith.constant 0 : index
    %c0_4 = arith.constant 0 : index
    %c0_5 = arith.constant 0 : index
    %3 = vector.load %arg2[%c0_3, %c0_4, %c0_5] : memref<2x8x128xf32, #tpu.memory_space<vmem>>, vector<1x8x128xf32>
    %4 = vector.shape_cast %3 : vector<1x8x128xf32> to vector<8x128xf32>
    %c0_6 = arith.constant 0 : index
    %c0_7 = arith.constant 0 : index
    %c0_8 = arith.constant 0 : index
    %5 = vector.load %arg3[%c0_6, %c0_7, %c0_8] : memref<2x128x8xf32, #tpu.memory_space<vmem>>, vector<1x128x8xf32>
    %6 = vector.shape_cast %5 : vector<1x128x8xf32> to vector<128x8xf32>
    %cst_9 = arith.constant dense<0.000000e+00> : vector<8x8xf32>
    %7 = tpu.matmul %4, %6, %cst_9 {dimension_numbers = #tpu.dot_dimension_numbers<[1], [0], [0], [1], [0, 0, 1, 1], [], []>} : vector<8x128xf32>, vector<128x8xf32>, vector<8x8xf32> -> vector<8x8xf32>
    %8 = arith.addf %2, %7 : vector<8x8xf32>
    %c1 = arith.constant 1 : index
    %c0_10 = arith.constant 0 : index
    %c0_11 = arith.constant 0 : index
    %9 = vector.load %arg2[%c1, %c0_10, %c0_11] : memref<2x8x128xf32, #tpu.memory_space<vmem>>, vector<1x8x128xf32>
    %10 = vector.shape_cast %9 : vector<1x8x128xf32> to vector<8x128xf32>
    %c1_12 = arith.constant 1 : index
    %c0_13 = arith.constant 0 : index
    %c0_14 = arith.constant 0 : index
    %11 = vector.load %arg3[%c1_12, %c0_13, %c0_14] : memref<2x128x8xf32, #tpu.memory_space<vmem>>, vector<1x128x8xf32>
    %12 = vector.shape_cast %11 : vector<1x128x8xf32> to vector<128x8xf32>
    %cst_15 = arith.constant dense<0.000000e+00> : vector<8x8xf32>
    %13 = tpu.matmul %10, %12, %cst_15 {dimension_numbers = #tpu.dot_dimension_numbers<[1], [0], [0], [1], [0, 0, 1, 1], [], []>} : vector<8x128xf32>, vector<128x8xf32>, vector<8x8xf32> -> vector<8x8xf32>
    %14 = arith.addf %8, %13 : vector<8x8xf32>
    %c0_16 = arith.constant 0 : index
    %c0_17 = arith.constant 0 : index
    %15 = vector.load %arg4[%c0_16, %c0_17] : memref<1x8xf32, #tpu.memory_space<vmem>>, vector<1x8xf32>
    %16 = vector.broadcast %15 : vector<1x8xf32> to vector<8x8xf32>
    %17 = arith.addf %14, %16 : vector<8x8xf32>
    %c0_18 = arith.constant 0 : index
    %c0_19 = arith.constant 0 : index
    %18 = vector.load %arg5[%c0_18, %c0_19] : memref<8x1xf32, #tpu.memory_space<vmem>>, vector<8x1xf32>
    %19 = vector.broadcast %18 : vector<8x1xf32> to vector<8x8xf32>
    %20 = arith.addf %17, %19 : vector<8x8xf32>
    %c0_20 = arith.constant 0 : index
    %c0_21 = arith.constant 0 : index
    %21 = vector.load %arg6[%c0_20, %c0_21] : memref<8x8xf32, #tpu.memory_space<vmem>>, vector<8x8xf32>
    tpu.vector_store %arg6[%c0_20, %c0_21], %20 {strides = array<i32>} : memref<8x8xf32, #tpu.memory_space<vmem>>, vector<8x8xf32>,
    return
  }
}

</mosaic_0001>

<bundles_post_ra>
// kernel: model_forward.3
= control target key start
LH: loop header
LB: loop body
LE: loop exit
PB: predicated region body
PF: predicated region fallthrough
CT: control target
= control target key end

     0   :  { %v556_v3 = vmov 0.0|0.0   ;;  %vm557_vm0 = vmmov 0   ;;  %v558_v11 = vmov 0.0   ;;  %v559_v13 = vmov 0   ;;  %s766_s0 = inlined_call_operand.vmem [shape: f32[8,64], index: 0, kind: input, shape index: {}]   ;;  %s767_s1 = inlined_call_operand.vmem [shape: f32[64,8], index: 1, kind: input, shape index: {}]   ;;  %s768_s2 = inlined_call_operand.vmem [shape: f32[2,8,128], index: 2, kind: input, shape index: {}]   ;;  %s769_s3 = inlined_call_operand.vmem [shape: f32[2,128,8], index: 3, kind: input, shape index: {}]   ;;  %s770_s4 = inlined_call_operand.vmem [shape: f32[1,8], index: 4, kind: input, shape index: {}]   ;;  %s771_s5 = inlined_call_operand.vmem [shape: f32[8,1], index: 5, kind: input, shape index: {}]   ;;  %s772_s6 = inlined_call_operand.hbm [shape: f32[8,8], index: 6, kind: output, shape index: {}]  }
   0x1   :  { %v34_v0 = vld [vmem:[%s769_s3] sm:$0xff]  ;;  %v35_v1 = vld [vmem:[%s769_s3 + $0x8] sm:$0xff]  ;;  %466 = vmatprep.subr.bf16.mxu0 %v556_v3  ;;  %490 = vmatprep.subr.bf16.mxu1 %v556_v3  ;;  %v36_v6 = vld [vmem:[%s769_s3 + $0x10] sm:$0xff] }
   0x2   :  { %v25_v2 = vld [vmem:[%s767_s1] sm:$0xff]  ;;  %v467_v4 = vpack.c.bf16 %v35_v1, %v34_v0  ;;  %v26_v5 = vld [vmem:[%s767_s1 + $0x8] sm:$0xff]  ;;  %v37_v7 = vld [vmem:[%s769_s3 + $0x18] sm:$0xff]  ;;  %428 = vmatprep.mubr.msk.f32.mxu1 %vm557_vm0, %v558_v11  ;;  %409 = vmatprep.mubr.msk.f32.mxu0 %vm557_vm0, %v558_v11 }
   0x3   :  { %v491_v8 = vpack.c.bf16 %v26_v5, %v25_v2  ;;  %v27_v9 = vld [vmem:[%s767_s1 + $0x10] sm:$0xff]  ;;  %v28_v10 = vld [vmem:[%s767_s1 + $0x18] sm:$0xff]  ;;  %v470_v12 = vpack.c.bf16 %v37_v7, %v36_v6  ;;  %531 = vset.pattern.permute.xlu0 %v559_v13  ;;  %v38_v15 = vld [vmem:[%s769_s3 + $0x20] sm:$0xff] }
   0x4   :  { %468 = vmatpush3.bf16.msra.mxu0 %v467_v4  ;;  %v494_v14 = vpack.c.bf16 %v28_v10, %v27_v9  ;;  %v39_v16 = vld [vmem:[%s769_s3 + $0x28] sm:$0xff]  ;;  %v29_v17 = vld [vmem:[%s767_s1 + $0x20] sm:$0xff]  ;;  %v40_v21 = vld [vmem:[%s769_s3 + $0x30] sm:$0xff] }
   0x5   :  { %492 = vmatpush3.bf16.msra.mxu1 %v491_v8  ;;  %469 = vmatprep.subr.bf16.mxu0 %v556_v3  ;;  %v30_v18 = vld [vmem:[%s767_s1 + $0x28] sm:$0xff]  ;;  %v473_v19 = vpack.c.bf16 %v39_v16, %v38_v15  ;;  %v41_v22 = vld [vmem:[%s769_s3 + $0x38] sm:$0xff]  ;;  %v31_v23 = vld [vmem:[%s767_s1 + $0x30] sm:$0xff] }
   0x6   :  { %493 = vmatprep.subr.bf16.mxu1 %v556_v3  ;;  %v497_v20 = vpack.c.bf16 %v30_v18, %v29_v17  ;;  %v32_v24 = vld [vmem:[%s767_s1 + $0x38] sm:$0xff]  ;;  %v476_v25 = vpack.c.bf16 %v41_v22, %v40_v21  ;;  %v42_v27 = vld [vmem:[%s769_s3 + $0x40] sm:$0xff]  ;;  %v43_v28 = vld [vmem:[%s769_s3 + $0x48] sm:$0xff] }
   0x7   :  { %v500_v26 = vpack.c.bf16 %v32_v24, %v31_v23  ;;  %v317_v29 = vld [vmem:[%s769_s3 + $0x80] sm:$0xff]  ;;  %v318_v30 = vld [vmem:[%s769_s3 + $0x88] sm:$0xff] }
   0x8   :  { %471 = vmatpush3.bf16.msra.mxu0 %v470_v12  ;;  %v292_v31 = vld [vmem:[%s771_s5] sm:$0xff] }
   0x9   :  { %495 = vmatpush3.bf16.msra.mxu1 %v494_v14  ;;  %472 = vmatprep.subr.bf16.mxu0 %v556_v3 }
   0xa   :  { %496 = vmatprep.subr.bf16.mxu1 %v556_v3 }
   0xc   :  { %474 = vmatpush3.bf16.msra.mxu0 %v473_v19 }
   0xd   :  { %498 = vmatpush3.bf16.msra.mxu1 %v497_v20  ;;  %475 = vmatprep.subr.bf16.mxu0 %v556_v3 }
   0xe   :  { %499 = vmatprep.subr.bf16.mxu1 %v556_v3 }
   0xf   :  { %11 = vsyncpa [#allocation3], 0  ;;  %v479_v32 = vpack.c.bf16 %v43_v28, %v42_v27  ;;  %295 = vperm.xlu0 %531, %v292_v31   ;;  %v24_v33 = vld [vmem:[%s766_s0] sm:$0xff]  ;;  %vm120_vm1 = vcmask 523264   ;;  %v503_v34 = vpack.c.bf16 %v318_v30, %v317_v29  ;;  %v44_v35 = vld [vmem:[%s769_s3 + $0x50] sm:$0xff]  ;;  %vm299_vm2 = vcmask 64512  }
  0x10   :  { %477 = vmatpush3.bf16.msra.mxu0 %v476_v25  ;;  %v45_v36 = vld [vmem:[%s769_s3 + $0x58] sm:$0xff]  ;;  %v319_v37 = vld [vmem:[%s769_s3 + $0x90] sm:$0xff]  ;;  %v46_v41 = vld [vmem:[%s769_s3 + $0x60] sm:$0xff] }
  0x11   :  { %501 = vmatpush3.bf16.msra.mxu1 %v500_v26  ;;  %478 = vmatprep.subr.bf16.mxu0 %v556_v3  ;;  %v320_v38 = vld [vmem:[%s769_s3 + $0x98] sm:$0xff]  ;;  %v482_v39 = vpack.c.bf16 %v45_v36, %v44_v35  ;;  %v47_v42 = vld [vmem:[%s769_s3 + $0x68] sm:$0xff]  ;;  %v321_v43 = vld [vmem:[%s769_s3 + $0xa0] sm:$0xff] }
  0x12   :  { %502 = vmatprep.subr.bf16.mxu1 %v556_v3  ;;  %v506_v40 = vpack.c.bf16 %v320_v38, %v319_v37  ;;  %v322_v44 = vld [vmem:[%s769_s3 + $0xa8] sm:$0xff]  ;;  %v485_v45 = vpack.c.bf16 %v47_v42, %v46_v41  ;;  %v48_v47 = vld [vmem:[%s769_s3 + $0x70] sm:$0xff]  ;;  %v49_v48 = vld [vmem:[%s769_s3 + $0x78] sm:$0xff] }
  0x13   :  { %v509_v46 = vpack.c.bf16 %v322_v44, %v321_v43  ;;  %v323_v49 = vld [vmem:[%s769_s3 + $0xb0] sm:$0xff]  ;;  %v324_v50 = vld [vmem:[%s769_s3 + $0xb8] sm:$0xff]  ;;  %v488_v51 = vpack.c.bf16 %v49_v48, %v48_v47  ;;  %v325_v53 = vld [vmem:[%s769_s3 + $0xc0] sm:$0xff] }
  0x14   :  { %429 = vmatmul.mubr.msk.f32.vlgmr.msra.gmra.mrb[0].mxu1 %vm120_vm1, %v24_v33  ;;  %480 = vmatpush3.bf16.msra.mxu0 %v479_v32  ;;  %v512_v52 = vpack.c.bf16 %v324_v50, %v323_v49  ;;  %v326_v54 = vld [vmem:[%s769_s3 + $0xc8] sm:$0xff]  ;;  %v33_v55 = vld [vmem:[%s768_s2] sm:$0xff]  ;;  %v327_v57 = vld [vmem:[%s769_s3 + $0xd0] sm:$0xff] }
  0x15   :  { %504 = vmatpush3.bf16.msra.mxu1 %v503_v34  ;;  %481 = vmatprep.subr.bf16.mxu0 %v556_v3  ;;  %v515_v56 = vpack.c.bf16 %v326_v54, %v325_v53  ;;  %v328_v58 = vld [vmem:[%s769_s3 + $0xd8] sm:$0xff]  ;;  %v329_v60 = vld [vmem:[%s769_s3 + $0xe0] sm:$0xff]  ;;  %v330_v61 = vld [vmem:[%s769_s3 + $0xe8] sm:$0xff] }
  0x16   :  { %505 = vmatprep.subr.bf16.mxu1 %v556_v3  ;;  %463 = vmatprep.mubr.msk.f32.mxu1 %vm557_vm0, %v558_v11  ;;  %v518_v59 = vpack.c.bf16 %v328_v58, %v327_v57  ;;  %v521_v62 = vpack.c.bf16 %v330_v61, %v329_v60  ;;  %v331_v63 = vld [vmem:[%s769_s3 + $0xf0] sm:$0xff]  ;;  %v332_v0 = vld [vmem:[%s769_s3 + $0xf8] sm:$0xff]  ;;  %v316_v2 = vld [vmem:[%s768_s2 + $0x8] sm:$0xff]  ;;  %s560_s3 = smov [#allocation2]  }
  0x17   :  { %v524_v1 = vpack.c.bf16 %v332_v0, %v331_v63  ;;  %v333_v10 = vld [vmem:[%s770_s4] ss:$0 sm:$0xff]  ;;  %s307_s9 = sshll.u32 %s560_s3, 4  ;;  %s308_s9 = int_to_ptr.vmem [resolvable:$true] %s307_s9 }
  0x18   :  { %483 = vmatpush3.bf16.msra.mxu0 %v482_v39  ;;  %s532_s2 = scalar_lea.vmem %s308_s9, 128  ;;  %p537_p1 = scmp.lt.s32.totalorder %s308_s9, %s308_s9 }
  0x19   :  { %507 = vmatpush3.bf16.msra.mxu1 %v506_v40  ;;  %484 = vmatprep.subr.bf16.mxu0 %v556_v3  ;;  %p533_p0 = scmp.ne.s32.totalorder %s308_s9, %s532_s2  ;;  %p538_p2 = scmp.lt.s32.totalorder %s532_s2, %s532_s2 }
  0x1a   :  { %508 = vmatprep.subr.bf16.mxu1 %v556_v3 }
  0x1b   :  { %p539_p3 = por %p538_p2, %p537_p1 }
  0x1c   :  { %486 = vmatpush3.bf16.msra.mxu0 %v485_v45 }
  0x1d   :  { %510 = vmatpush3.bf16.msra.mxu1 %v509_v46  ;;  %487 = vmatprep.subr.bf16.mxu0 %v556_v3  ;;  %p540_p4 = pnand %p539_p3, %p533_p0 }
  0x1e   :  { %511 = vmatprep.subr.bf16.mxu1 %v556_v3 }
  0x20   :  { %489 = vmatpush3.bf16.msra.mxu0 %v488_v51 }
  0x21   :  { %513 = vmatpush3.bf16.msra.mxu1 %v512_v52 }
  0x22   :  { %514 = vmatprep.subr.bf16.mxu1 %v556_v3 }
  0x23   :  { %410 = vmatmul.mubr.f32.vlgmr.msra.gmra.mrb[0].mxu0 %v33_v55 }
  0x25   :  { %516 = vmatpush3.bf16.msra.mxu1 %v515_v56 }
  0x26   :  { %517 = vmatprep.subr.bf16.mxu1 %v556_v3 }
  0x29   :  { %519 = vmatpush3.bf16.msra.mxu1 %v518_v59 }
  0x2a   :  { %520 = vmatprep.subr.bf16.mxu1 %v556_v3 }
  0x2d   :  { %522 = vmatpush3.bf16.msra.mxu1 %v521_v62 }
  0x2e   :  { %523 = vmatprep.subr.bf16.mxu1 %v556_v3 }
  0x31   :  { %525 = vmatpush3.bf16.msra.mxu1 %v524_v1 }
  0x34   :  { %464 = vmatmul.mubr.f32.vlgmr.msra.gmra.mrb[2].mxu1 %v316_v2 }
  0x8e   :  { %v296_v13 = vpop.permute.xlu0 %295 }
  0xe7   :  { %v190_v4 = vpop.f32.mrb[0].mxu1 }
  0xe8   :  { %v430_v5 = vpop.f32.mrb[1].mxu1 }
  0xf6   :  { %v116_v6 = vpop.f32.mrb[0].mxu0 }
  0xf7   :  { %v191_v7 = vadd.f32 %v190_v4, %v116_v6  ;;  %v411_v8 = vpop.f32.mrb[1].mxu0 }
 0x107   :  { %v279_v9 = vpop.f32.mrb[2].mxu1 }
 0x108   :  { %v283_v11 = vadd.f32 %v279_v9, %v191_v7  ;;  %v465_v12 = vpop.f32.mrb[3].mxu1 }
 0x10a   :  { %v291_v3 = vadd.f32 %v333_v10, %v283_v11 }
 0x10c   :  { %v298_v14 = vadd.f32 %v296_v13, %v291_v3 }
 0x10e   :  { %300 = vst.msk [vmem:[#allocation2] sm:$0xff] %vm299_vm2, %v298_v14 }
 0x10f   :  { %543 = shalt.err (!%p540_p4)
}
 0x110   :  { %s544_s4 = scalar_lea.hbm %s772_s6, 128 }
 0x111   :  { %p545_p5 = scmp.ne.s32.totalorder %s772_s6, %s544_s4  ;;  %p548_p6 = scmp.lt.u32.totalorder %s544_s4, %s772_s6 }
 0x113   :  { %p550_p7 = pnand %p548_p6, %p545_p5 }
 0x115   :  { %553 = shalt.err (!%p550_p7)
}
 0x116   :  { %310 = dma.vmem_to_hbm [thread:$0]  %s308_s9, 128, %s772_s6, [#allocation3]  }
 0x117   :  { %554 = dma.done.wait [#allocation3], 128  }
 0x118   :  { %555 = vsyncadd [#allocation3], 4294967168 }
 0x119   :  { %314 = vsyncpa [#allocation3], 1 }

// kernel: model_forward.2
= control target key start
LH: loop header
LB: loop body
LE: loop exit
PB: predicated region body
PF: predicated region fallthrough
CT: control target
= control target key end

     0   :  { %10 = vsyncpa [#allocation3], 0  ;;  %s736_s18 = smov 0   ;;  %s869_s0 = inlined_call_operand.vmem [shape: f32[2], index: 0, kind: input, shape index: {}]   ;;  %s870_s1 = inlined_call_operand.vmem [shape: f32[2,48,384], index: 1, kind: input, shape index: {}]   ;;  %s871_s2 = inlined_call_operand.vmem [shape: f32[2,72,384], index: 2, kind: input, shape index: {}]   ;;  %s872_s3 = inlined_call_operand.vmem [shape: f32[24,128], index: 3, kind: input, shape index: {}]   ;;  %s873_s4 = inlined_call_operand.vmem [shape: f32[8,24], index: 4, kind: input, shape index: {}]   ;;  %s874_s5 = inlined_call_operand.vmem [shape: f32[2,8,128], index: 5, kind: output, shape index: {}]  }
   0x1 LB: > { %s742_s19 = sadd.s32 4294967295, %s700_s18   ;;  %p610_p0 = scmp.ge.s32.totalorder %s700_s18, 1  ;;  %s700_s18 = sphi %s736_s18, %s16_s18  }
   0x2   : > { %p162_p1 = scmp.lt.s32.totalorder %s700_s18, 3  ;;  %s175_s22 = sshll.u32 %s869_s0, 4  ;;  %s176_s22 = int_to_ptr.vmem [resolvable:$true] %s175_s22 }
   0x3   : > { %p655_p3 = scmp.eq.s32.totalorder %s742_s19, 0  ;;  %s675_s24 = scalar_lea.vmem %s176_s22, 16 }
   0x4   : > { %p749_p2 = pnand %p610_p0, %p162_p1  ;;  %p676_p6 = scmp.ne.s32.totalorder %s176_s22, %s675_s24 }
   0x5   : > { %p683_p10 = scmp.lt.s32.totalorder %s176_s22, %s176_s22  ;;  %p684_p11 = scmp.lt.s32.totalorder %s675_s24, %s675_s24 }
   0x6   : > { %p651_p4 = pneg %p749_p2 }
   0x7   : > { %p685_p12 = por %p684_p11, %p683_p10 }
   0x8   : > { %p652_p5 = pnand %p655_p3, %p651_p4 }
   0xa   : > { %p677_p7 = pneg %p652_p5 }
   0xc   : > { %p678_p8 = pnand %p677_p7, %p676_p6 }
   0xe   : > { %p679_p9 = pneg %p678_p8 }
  0x10   : > { %p686_p13 = pnand %p685_p12, %p679_p9 }
  0x12   : > { %689 = shalt.err (!%p686_p13)
}
  0x13   : > { %s702_s25 = smov [#allocation2]   ;;  %210 = sbr.rel (%p749_p2) target bundleno = 335 (0x14f), region = 40 }
  0x14   : > { %654 = dma.vmem_to_smem (!%p652_p5), %s176_s22, 16, %s702_s25, [#allocation3]  }
  0x1a   : > { %695 = dma.done.wait (%p655_p3), [#allocation3], 16  }
  0x1b   : > { %697 = vsyncadd (%p655_p3), [#allocation3], 4294967280 }
  0x1c   : > { %216 = sfence }
  0x1d   : > { %p243_p0 = scmp.lt.s32.totalorder %s742_s19, 1  ;;  %s257_s26 = sld [smem:[#allocation2]]  ;;  %v703_v0 = vmov 0.0|0.0   ;;  %v704_v1 = vmov 0.0   ;;  %vm705_vm0 = vmmov 0   ;;  %vm361_vm1 = vcmask 195584  }
  0x1e   : > { %s618_s27 = sld [smem:[#allocation2 + $0x1]]  ;;  %642 = vmatprep.subr.bf16.mxu1 %v703_v0  ;;  %429 = vmatprep.mubr.f32.mxu0 %v704_v1 }
  0x1f   : > { %s877_s19 = smov (!%p243_p0, %s742_s19), 1  ;;  %635 = vmatprep.mubr.msk.f32.mxu1 %vm705_vm0, %v704_v1 }
  0x20   : > { %s645_s28 = smul.u32 144, %s877_s19  ;;  %s617_s21 = sshll.u32 %s877_s19, 3 }
  0x21   : > { %s646_s29 = smul.u32 216, %s877_s19  ;;  %s256_s24 = scalar_lea.vmem %s874_s5, %s617_s21 }
  0x22   : > { %s775_s7 = scalar_lea.vmem %s870_s1, %s645_s28 }
  0x23   : > { %v777_v2 = vstv %s257_s26  ;;  %s782_s10 = scalar_lea.vmem %s871_s2, %s646_s29  ;;  %v269_v3 = vld [vmem:[%s775_s7 + $0x50] sm:$0xff]  ;;  %v272_v5 = vld [vmem:[%s775_s7 + $0x68] sm:$0xff]  ;;  %v263_v14 = vld [vmem:[%s775_s7 + $0x20] sm:$0xff] }
  0x24   : > { %v785_v4 = vstv %s618_s27  ;;  %v278_v6 = vld [vmem:[%s782_s10 + $0x8] sm:$0xff]  ;;  %v281_v7 = vld [vmem:[%s782_s10 + $0x20] sm:$0xff]  ;;  %v297_v10 = vld [vmem:[%s782_s10 + $0x50] sm:$0xff] }
  0x25   : > { %v288_v8 = vmul.f32 %v777_v2, %v278_v6  ;;  %v291_v9 = vmul.f32 %v777_v2, %v281_v7  ;;  %v300_v11 = vld [vmem:[%s782_s10 + $0x68] sm:$0xff]  ;;  %v334_v12 = vld [vmem:[%s782_s10 + $0x98] sm:$0xff]  ;;  %v307_v15 = vmul.f32 %v785_v4, %v297_v10  ;;  %v337_v17 = vld [vmem:[%s782_s10 + $0xb0] sm:$0xff] }
  0x26   : > { %v260_v13 = vld [vmem:[%s775_s7 + $0x8] sm:$0xff]  ;;  %v310_v16 = vmul.f32 %v785_v4, %v300_v11  ;;  %v343_v18 = vmul.f32 %v334_v12, %v269_v3  ;;  %v271_v20 = vld [vmem:[%s775_s7 + $0x60] sm:$0xff]  ;;  %v346_v24 = vmul.f32 %v337_v17, %v272_v5  ;;  %v280_v25 = vld [vmem:[%s782_s10 + $0x18] sm:$0xff] }
  0x27   : > { %v268_v19 = vld [vmem:[%s775_s7 + $0x48] sm:$0xff]  ;;  %v277_v21 = vld [vmem:[%s782_s10] sm:$0xff]  ;;  %v316_v22 = vadd.f32 %v307_v15, %v288_v8  ;;  %v290_v30 = vmul.f32 %v777_v2, %v280_v25  ;;  %v333_v33 = vld [vmem:[%s782_s10 + $0x90] sm:$0xff] }
  0x28   : > { %v319_v23 = vadd.f32 %v310_v16, %v291_v9  ;;  %v287_v26 = vmul.f32 %v777_v2, %v277_v21  ;;  %v296_v27 = vld [vmem:[%s782_s10 + $0x48] sm:$0xff]  ;;  %v299_v28 = vld [vmem:[%s782_s10 + $0x60] sm:$0xff]  ;;  %v262_v37 = vld [vmem:[%s775_s7 + $0x18] sm:$0xff]  ;;  %v342_v42 = vmul.f32 %v333_v33, %v268_v19 }
  0x29   : > { %v259_v29 = vld [vmem:[%s775_s7] sm:$0xff]  ;;  %v306_v31 = vmul.f32 %v785_v4, %v296_v27  ;;  %v309_v32 = vmul.f32 %v785_v4, %v299_v28  ;;  %v336_v34 = vld [vmem:[%s782_s10 + $0xa8] sm:$0xff]  ;;  %v325_v35 = vmul.f32 %v316_v22, %v260_v13  ;;  %v270_v38 = vld [vmem:[%s775_s7 + $0x58] sm:$0xff] }
  0x2a   : > { %v328_v36 = vmul.f32 %v319_v23, %v263_v14  ;;  %v273_v39 = vld [vmem:[%s775_s7 + $0x70] sm:$0xff]  ;;  %v345_v43 = vmul.f32 %v336_v34, %v271_v20  ;;  %v282_v45 = vld [vmem:[%s782_s10 + $0x28] sm:$0xff]  ;;  %v298_v46 = vld [vmem:[%s782_s10 + $0x58] sm:$0xff] }
  0x2b   : > { %v315_v40 = vadd.f32 %v306_v31, %v287_v26  ;;  %v318_v41 = vadd.f32 %v309_v32, %v290_v30  ;;  %v279_v44 = vld [vmem:[%s782_s10 + $0x10] sm:$0xff]  ;;  %v352_v47 = vadd.f32 %v343_v18, %v325_v35  ;;  %v292_v50 = vmul.f32 %v777_v2, %v282_v45  ;;  %v335_v52 = vld [vmem:[%s782_s10 + $0xa0] sm:$0xff]  ;;  %v338_v53 = vld [vmem:[%s782_s10 + $0xb8] sm:$0xff] }
  0x2c   : > { %v355_v48 = vadd.f32 %v346_v24, %v328_v36  ;;  %v289_v49 = vmul.f32 %v777_v2, %v279_v44  ;;  %v301_v51 = vld [vmem:[%s782_s10 + $0x70] sm:$0xff]  ;;  %v308_v57 = vmul.f32 %v785_v4, %v298_v46  ;;  %v275_v59 = vld [vmem:[%s775_s7 + $0x80] sm:$0xff]  ;;  %v284_v60 = vld [vmem:[%s782_s10 + $0x38] sm:$0xff]  ;;  %v344_v63 = vmul.f32 %v335_v52, %v270_v38 }
  0x2d   : > { %v324_v54 = vmul.f32 %v315_v40, %v259_v29  ;;  %v327_v55 = vmul.f32 %v318_v41, %v262_v37  ;;  %v261_v56 = vld [vmem:[%s775_s7 + $0x10] sm:$0xff]  ;;  %v311_v58 = vmul.f32 %v785_v4, %v301_v51  ;;  %v264_v62 = vld [vmem:[%s775_s7 + $0x28] sm:$0xff]  ;;  %v347_v0 = vmul.f32 %v338_v53, %v273_v39  ;;  %v303_v5 = vld [vmem:[%s782_s10 + $0x80] sm:$0xff] }
  0x2e   : > { %v638_v61 = vpack.c.bf16 %v355_v48, %v352_v47  ;;  %v294_v3 = vmul.f32 %v777_v2, %v284_v60  ;;  %v340_v6 = vld [vmem:[%s782_s10 + $0xc8] sm:$0xff]  ;;  %v317_v9 = vadd.f32 %v308_v57, %v289_v49  ;;  %v266_v11 = vld [vmem:[%s775_s7 + $0x38] sm:$0xff]  ;;  %v283_v13 = vld [vmem:[%s782_s10 + $0x30] sm:$0xff]  ;;  %v313_v15 = vmul.f32 %v785_v4, %v303_v5 }
  0x2f   : > { %v351_v7 = vadd.f32 %v342_v42, %v324_v54  ;;  %v354_v8 = vadd.f32 %v345_v43, %v327_v55  ;;  %v320_v10 = vadd.f32 %v311_v58, %v292_v50  ;;  %v274_v12 = vld [vmem:[%s775_s7 + $0x78] sm:$0xff]  ;;  %v349_v16 = vmul.f32 %v340_v6, %v275_v59  ;;  %v265_v17 = vld [vmem:[%s775_s7 + $0x30] sm:$0xff]  ;;  %v339_v20 = vld [vmem:[%s782_s10 + $0xc0] sm:$0xff] }
  0x30   : > { %v302_v14 = vld [vmem:[%s782_s10 + $0x78] sm:$0xff]  ;;  %639 = vmatprep.subr.bf16.mxu0 %v638_v61  ;;  %v293_v18 = vmul.f32 %v777_v2, %v283_v13  ;;  %v276_v21 = vld [vmem:[%s775_s7 + $0x88] sm:$0xff]  ;;  %v326_v23 = vmul.f32 %v317_v9, %v261_v56  ;;  %v348_v25 = vmul.f32 %v339_v20, %v274_v12  ;;  %v285_v26 = vld [vmem:[%s782_s10 + $0x40] sm:$0xff]  ;;  %v322_v29 = vadd.f32 %v313_v15, %v294_v3 }
  0x31   : > { %v312_v19 = vmul.f32 %v785_v4, %v302_v14  ;;  %v640_v22 = vpack.c.bf16 %v354_v8, %v351_v7  ;;  %v329_v24 = vmul.f32 %v320_v10, %v264_v62  ;;  %v304_v27 = vld [vmem:[%s782_s10 + $0x88] sm:$0xff]  ;;  %v341_v28 = vld [vmem:[%s782_s10 + $0xd0] sm:$0xff]  ;;  %v295_v31 = vmul.f32 %v777_v2, %v285_v26  ;;  %v267_v35 = vld [vmem:[%s775_s7 + $0x40] sm:$0xff] }
  0x32   : > { %v314_v32 = vmul.f32 %v785_v4, %v304_v27  ;;  %v353_v33 = vadd.f32 %v344_v63, %v326_v23  ;;  %v331_v36 = vmul.f32 %v322_v29, %v266_v11  ;;  %v350_v39 = vmul.f32 %v341_v28, %v276_v21  ;;  %v360_v44 = vld [vmem:[%s873_s4] sm:$0xff]  ;;  %v520_v59 = vld [vmem:[%s872_s3 + $0x8] sm:$0xff]  ;;  %v522_v61 = vld [vmem:[%s872_s3 + $0x10] sm:$0xff] }
  0x33   : > { %v321_v30 = vadd.f32 %v312_v19, %v293_v18  ;;  %641 = vmatpush1.bf16.msra.mxu0 %v640_v22  ;;  %v356_v34 = vadd.f32 %v347_v0, %v329_v24  ;;  %v508_v48 = vld [vmem:[%s872_s3] sm:$0xff] }
  0x34   : > { %v323_v38 = vadd.f32 %v314_v32, %v295_v31  ;;  %v358_v41 = vadd.f32 %v349_v16, %v331_v36 }
  0x35   : > { %v330_v37 = vmul.f32 %v321_v30, %v265_v17  ;;  %v643_v40 = vpack.c.bf16 %v356_v34, %v353_v33 }
  0x36   : > { %v332_v43 = vmul.f32 %v323_v38, %v267_v35  ;;  %369 = vmatprep.subr.mxu0 %v358_v41 }
  0x37   : > { %v357_v42 = vadd.f32 %v348_v25, %v330_v37  ;;  %644 = vmatpush3.bf16.msra.mxu1 %v643_v40 }
  0x38   : > { %633 = vmatprep.subr.mxu1 %v704_v1  ;;  %v359_v2 = vadd.f32 %v350_v39, %v332_v43 }
  0x39   : > { %370 = vmatpush1.msra.mxu0 %v357_v42 }
  0x3a   : > { %619 = vmatmul.mubr.msk.f32.vlgmr.msra.gmra.mrb[0].mxu0 %vm361_vm1, %v360_v44 }
  0x3b   : > { %634 = vmatpush3.msra.mxu1 %v359_v2 }
  0x3c   : > { %636 = vmatmul.mubr.msk.f32.vlgmr.msra.gmra.mrb[0].mxu1 %vm361_vm1, %v360_v44 }
 0x10d   : > { %v431_v4 = vpop.f32.mrb[0].mxu0 }
 0x10e   : > { %v433_v45 = vpop.f32.mrb[1].mxu0 }
 0x10f   : > { %v506_v46 = vmax.f32 %v431_v4, %v433_v45  ;;  %v502_v47 = vpop.f32.mrb[0].mxu1 }
 0x110   : > { %v637_v49 = vpop.f32.mrb[1].mxu1 }
 0x111   : > { %v507_v50 = vmax.f32 %v506_v46, %v502_v47 }
 0x113   : > { %v509_v51 = vadd.f32 %v508_v48, %v507_v50 }
 0x115   : > { %v511_v52 = vmin.f32 %v509_v51, 0.0  ;;  %vm510_vm2 = vcmp.gt.f32.partialorder %v509_v51, 0.0 }
 0x117   : > { %v512_v53 = vmul.f32 1.442695, %v511_v52 }
 0x119   : > { %669 = vpow2.f32 %v512_v53 }
 0x123   : > { %v670_v1 = vpop.eup %669 }
 0x124   : > { %v621_v54 = vadd.f32 -1.0, %v670_v1 }
 0x126   : > { %v515_v55 = vsel %vm510_vm2, %v509_v51, %v621_v54 }
 0x127   : > { %v516_v56 = vmul.f32 %v515_v55, %v515_v55 }
 0x129   : > { %v517_v57 = vmul.f32 -0.5, %v516_v56 }
 0x12b   : > { %v518_v58 = vmul.f32 1.442695, %v517_v57 }
 0x12d   : > { %671 = vpow2.f32 %v518_v58 }
 0x137   : > { %v672_v60 = vpop.eup %671 }
 0x138   : > { %v521_v62 = vmul.f32 %v672_v60, %v520_v59 }
 0x13a   : > { %v523_v63 = vadd.f32 %v522_v61, %v521_v62 }
 0x13c   : > { %v525_v0 = vmin.f32 %v523_v63, 0.0  ;;  %vm524_vm3 = vcmp.gt.f32.partialorder %v523_v63, 0.0 }
 0x13e   : > { %v526_v3 = vmul.f32 1.442695, %v525_v0 }
 0x140   : > { %673 = vpow2.f32 %v526_v3 }
 0x14a   : > { %v674_v5 = vpop.eup %673 }
 0x14b   : > { %v622_v6 = vadd.f32 -1.0, %v674_v5 }
 0x14d   : > { %v529_v7 = vsel %vm524_vm3, %v523_v63, %v622_v6 }
 0x14e   : > { %530 = vst [vmem:[%s256_s24] sm:$0xff] %v529_v7 }
 0x14f PF: > { %s16_s18 = sadd.s32 1, %s700_s18  }
 0x150   : > { %p13_p1 = scmp.ge.s32.totalorder %s16_s18, 4  }
 0x152   :  { %15 = sbr.rel (!%p13_p1) target bundleno = 1 (0x1), region = 78 }
 0x159   :  { %550 = vsyncpa [#allocation3], 1 }
 0x15a   :  { %552 = vsyncpa [#allocation3 + $0x1], 1 }

</bundles_post_ra>
